<compile_context>
chip_gen: v7x
topology: tpu7x:2x2x1
jax: 0.10.0
libtpu: 0.0.40
codegen_flags: <defaults>
</compile_context>

<pallas_src>
import jax
import jax.numpy as jnp
from jax.experimental import pallas as pl
from jax.experimental.pallas import tpu as pltpu

_LANE = 128


def _tanhkcothx_kernel(x_ref, o_ref):
    x = x_ref[...].astype(jnp.float32)
    # tanh(coth(x) * x) == tanh(x / tanh(x)).
    # Direct divide keeps full precision (approx reciprocal would break 1e-5 tolerance).
    # x == 0 -> NaN, exactly matching the PyTorch/JAX reference semantics.
    o_ref[...] = jnp.tanh(x / jnp.tanh(x)).astype(o_ref.dtype)


def _pick_lane_width(n_pad):
    """Widest lane-dense width (multiple of 128) that divides the flat length."""
    for c in (8192, 4096, 2048, 1024, 512, 256, 128):
        if n_pad % c == 0:
            return c
    return _LANE  # unreachable: caller guarantees n_pad % 128 == 0


def tanhkcothx(x, *, target_block_bytes=2 << 20):
    """Elementwise tanh(x / tanh(x)) via a Pallas TPU kernel."""
    orig_shape = x.shape
    orig_dtype = x.dtype
    n = x.size

    x_flat = jnp.ravel(x)
    pad = (-n) % _LANE
    if pad:
        # Minimal (<128 elem) pad with 1.0 so x/tanh(x) stays finite in the pad region.
        x_flat = jnp.concatenate([x_flat, jnp.ones((pad,), dtype=orig_dtype)])
    n_pad = n + pad

    c = _pick_lane_width(n_pad)
    rows = n_pad // c
    x2d = x_flat.reshape(rows, c)

    itemsize = jnp.dtype(orig_dtype).itemsize
    tr = max(1, target_block_bytes // (c * itemsize))
    if tr >= rows:
        tile_rows = rows  # full first dim -> always a legal block, grid of 1
    else:
        tile_rows = max(8, (tr // 8) * 8)  # keep (8,128) alignment for interior blocks
    grid = (pl.cdiv(rows, tile_rows),)

    out2d = pl.pallas_call(
        _tanhkcothx_kernel,
        out_shape=jax.ShapeDtypeStruct((rows, c), orig_dtype),
        grid_spec=pltpu.PrefetchScalarGridSpec(
            num_scalar_prefetch=0,
            grid=grid,
            in_specs=[pl.BlockSpec((tile_rows, c), lambda i: (i, 0))],
            out_specs=pl.BlockSpec((tile_rows, c), lambda i: (i, 0)),
        ),
        compiler_params=pltpu.CompilerParams(
            dimension_semantics=("parallel",),
        ),
    )(x2d)

    out_flat = out2d.reshape(-1)
    if pad:
        out_flat = out_flat[:n]
    return out_flat.reshape(orig_shape)


class TanhCothx:
    """JAX port of the PyTorch TanhCothx module (alpha param unused in forward)."""

    def __init__(self):
        # nn.Parameter(torch.tensor(1.0)) — deterministic init; not used in forward.
        self.alpha = jnp.float32(1.0)

    def __call__(self, x):
        return tanhkcothx(x)


if __name__ == "__main__":
    key = jax.random.PRNGKey(0)
    x = jax.random.normal(key, (2, 4, 16, 16), dtype=jnp.float32)

    model = TanhCothx()
    out = model(x)
    out = jax.block_until_ready(out)

    # reference check in plain JAX
    ref = jnp.tanh(x / jnp.tanh(x))
    assert out.shape == x.shape and out.dtype == x.dtype
    assert jnp.allclose(out, ref, atol=1e-5, rtol=1e-5)
    print("KERNEL_OK")
</pallas_src>

<mosaic_0001>
module attributes {stable_mosaic.version = 11 : i64} {
  func.func @_tanhkcothx_kernel(%arg0: i32, %arg1: memref<1x2048xf32, #tpu.memory_space<vmem>>, %arg2: memref<1x2048xf32, #tpu.memory_space<vmem>>) attributes {dimension_semantics = [#tpu.dimension_semantics<parallel>], iteration_bounds = array<i64: 1>, scalar_prefetch = 0 : i64, scratch_operands = 0 : i64, tpu.core_type = #tpu.core_type<tc>, window_params = [{transform_indices = @transform_0, window_bounds = array<i64: 1, 2048>}, {transform_indices = @transform_1, window_bounds = array<i64: 1, 2048>}]} {
    %c0 = arith.constant 0 : index
    %c0_0 = arith.constant 0 : index
    %0 = vector.load %arg1[%c0, %c0_0] : memref<1x2048xf32, #tpu.memory_space<vmem>>, vector<1x2048xf32>
    %1 = math.tanh %0 : vector<1x2048xf32>
    %2 = arith.divf %0, %1 : vector<1x2048xf32>
    %3 = math.tanh %2 : vector<1x2048xf32>
    %c0_1 = arith.constant 0 : index
    %c0_2 = arith.constant 0 : index
    %4 = vector.load %arg2[%c0_1, %c0_2] : memref<1x2048xf32, #tpu.memory_space<vmem>>, vector<1x2048xf32>
    tpu.vector_store %arg2[%c0_1, %c0_2], %3 {strides = array<i32>} : memref<1x2048xf32, #tpu.memory_space<vmem>>, vector<1x2048xf32>,
    return
  }
  func.func @transform_0(%arg0: i32) -> (i32, i32) {
    %c0_i32 = arith.constant 0 : i32
    %c0_i32_0 = arith.constant 0 : i32
    return %arg0, %c0_i32 : i32, i32
  }
  func.func @transform_1(%arg0: i32) -> (i32, i32) {
    %c0_i32 = arith.constant 0 : i32
    %c0_i32_0 = arith.constant 0 : i32
    return %arg0, %c0_i32 : i32, i32
  }
}

</mosaic_0001>

<bundles_post_ra>
// kernel: tpu_custom_call.1
= control target key start
LH: loop header
LB: loop body
LE: loop exit
PB: predicated region body
PF: predicated region fallthrough
CT: control target
= control target key end

     0   :  { %6 = vsyncpa [#allocation3], 0  ;;  %s146_s0 = inlined_call_operand.hbm [shape: f32[1,2048], index: 0, kind: input, shape index: {}]   ;;  %s147_s1 = inlined_call_operand.hbm [shape: f32[1,2048], index: 1, kind: output, shape index: {}]  }
   0x1   :  { %7 = vsyncpa [#allocation4], 0  ;;  %s110_s6 = smov [#allocation2]   ;;  %s62_s10 = scalar_lea.hbm %s146_s0, 256 }
   0x2   :  { %s14_s7 = sshll.u32 %s110_s6, 4  ;;  %p63_p0 = scmp.ne.s32.totalorder %s146_s0, %s62_s10  ;;  %s15_s7 = int_to_ptr.vmem [resolvable:$true] %s14_s7 }
   0x3   :  { %p66_p1 = scmp.lt.u32.totalorder %s62_s10, %s146_s0 }
   0x5   :  { %p68_p2 = pnand %p66_p1, %p63_p0 }
   0x7   :  { %71 = shalt.err (!%p68_p2)
}
   0x8   :  { %s72_s15 = scalar_lea.vmem %s15_s7, 256  ;;  %p77_p4 = scmp.lt.s32.totalorder %s15_s7, %s15_s7 }
   0x9   :  { %p73_p3 = scmp.ne.s32.totalorder %s15_s7, %s72_s15  ;;  %p78_p5 = scmp.lt.s32.totalorder %s72_s15, %s72_s15 }
   0xb   :  { %p79_p6 = por %p78_p5, %p77_p4 }
   0xd   :  { %p80_p7 = pnand %p79_p6, %p73_p3 }
   0xf   :  { %83 = shalt.err (!%p80_p7)
}
  0x10   :  { %17 = dma.hbm_to_vmem [thread:$0]  %s146_s0, 256, %s15_s7, [#allocation3]  }
  0x11   :  { %106 = dma.done.wait [#allocation3], 256  }
  0x12   :  { %107 = vsyncadd [#allocation3], 4294967040  ;;  %v21_v0 = vld [vmem:[#allocation2] sm:$0xff]  ;;  %v22_v1 = vld [vmem:[#allocation2 + $0x8] sm:$0xff]  ;;  %s111_s18 = smov [#allocation5]  }
  0x13   :  { %50 = vtanh.f32 %v21_v0  ;;  %s39_s19 = sshll.u32 %s111_s18, 4  ;;  %s40_s19 = int_to_ptr.vmem [resolvable:$true] %s39_s19 }
  0x14   :  { %52 = vtanh.f32 %v22_v1  ;;  %s84_s0 = scalar_lea.vmem %s40_s19, 256  ;;  %p89_p9 = scmp.lt.s32.totalorder %s40_s19, %s40_s19 }
  0x15   :  { %p85_p8 = scmp.ne.s32.totalorder %s40_s19, %s84_s0  ;;  %p90_p10 = scmp.lt.s32.totalorder %s84_s0, %s84_s0 }
  0x17   :  { %p91_p11 = por %p90_p10, %p89_p9 }
  0x19   :  { %p92_p12 = pnand %p91_p11, %p85_p8 }
  0x1d   :  { %v51_v2 = vpop.eup %50 }
  0x1e   :  { %v53_v3 = vpop.eup %52  ;;  %54 = vrcp.f32 %v51_v2 }
  0x1f   :  { %56 = vrcp.f32 %v53_v3 }
  0x28   :  { %v55_v4 = vpop.eup %54 }
  0x29   :  { %v57_v5 = vpop.eup %56  ;;  %v26_v6 = vmul.f32 %v55_v4, %v21_v0 }
  0x2a   :  { %v28_v7 = vmul.f32 %v57_v5, %v22_v1 }
  0x2b   :  { %58 = vtanh.f32 %v26_v6 }
  0x2c   :  { %60 = vtanh.f32 %v28_v7 }
  0x35   :  { %v59_v8 = vpop.eup %58 }
  0x36   :  { %v61_v9 = vpop.eup %60  ;;  %31 = vst [vmem:[#allocation5] sm:$0xff] %v59_v8 }
  0x37   :  { %32 = vst [vmem:[#allocation5 + $0x8] sm:$0xff] %v61_v9 }
  0x38   :  { %95 = shalt.err (!%p92_p12)
}
  0x39   :  { %s96_s22 = scalar_lea.hbm %s147_s1, 256 }
  0x3a   :  { %p97_p13 = scmp.ne.s32.totalorder %s147_s1, %s96_s22  ;;  %p100_p0 = scmp.lt.u32.totalorder %s96_s22, %s147_s1 }
  0x3c   :  { %p102_p1 = pnand %p100_p0, %p97_p13 }
  0x3e   :  { %105 = shalt.err (!%p102_p1)
}
  0x3f   :  { %42 = dma.vmem_to_hbm [thread:$0]  %s40_s19, 256, %s147_s1, [#allocation4]  }
  0x40   :  { %108 = dma.done.wait [#allocation4], 256  }
  0x41   :  { %109 = vsyncadd [#allocation4], 4294967040 }
  0x42   :  { %46 = vsyncpa [#allocation3], 1 }
  0x43   :  { %47 = vsyncpa [#allocation4], 1 }

</bundles_post_ra>
